<compile_context>
chip_gen: v6e
topology: v6e:2x2x1
jax: 0.10.0
libtpu: 0.0.40
codegen_flags: <defaults>
</compile_context>

<pallas_src>
import functools

import jax
import jax.numpy as jnp
from jax.experimental import pallas as pl
from jax.experimental.pallas import tpu as pltpu

EPS = 1e-5


def _trunkbranch_kernel(x_ref, w1_ref, w2_ref, p_ref, o_ref, *, matmul_dtype):
    """One branch: x_ref (C,L); w*_ref (C,C); p_ref (C,4)=[g1,be1,g2,be2]; o_ref (C,L)."""
    x = x_ref[...].astype(jnp.float32)                 # (C, L)
    g1, be1 = p_ref[:, 0:1], p_ref[:, 1:2]             # (C, 1) each
    g2, be2 = p_ref[:, 2:3], p_ref[:, 3:4]

    def conv_bn_relu(h, w, g, be):
        # Pointwise Conv1d == (C_out, C_in) @ (C_in, L) on the MXU.  Conv bias dropped:
        # it is cancelled exactly by the BN mean subtraction below.
        y = jnp.dot(w.astype(matmul_dtype), h.astype(matmul_dtype),
                    preferred_element_type=jnp.float32)          # (C, L) f32
        # BatchNorm1d, training mode: per-channel stats over the N*L axis (here L),
        # one-pass (biased) variance, gamma folded into the scale (rsqrt runs on EUP).
        mean = jnp.mean(y, axis=-1, keepdims=True)               # (C, 1)
        var = jnp.mean(y * y, axis=-1, keepdims=True) - mean * mean
        scale = g * jax.lax.rsqrt(var + EPS)
        return jnp.maximum((y - mean) * scale + be, 0.0)

    h1 = conv_bn_relu(x, w1_ref[...], g1, be1)
    h2 = conv_bn_relu(h1, w2_ref[...], g2, be2)
    o_ref[...] = h2.astype(o_ref.dtype)


def trunk_branch_forward_batched(x, w1, w2, bn, *, matmul_dtype=jnp.float32):
    """Fused forward for B independent TrunkBranch instances.

    x  : (B, C, L)   inputs (one per branch)
    w1 : (B, C, C)   conv1 weights (kernel dim squeezed)
    w2 : (B, C, C)   conv2 weights
    bn : (B, C, 4)   packed per-channel [gamma1, beta1, gamma2, beta2]
    returns (B, C, L) float32
    """
    B, C, L = x.shape
    kernel = functools.partial(_trunkbranch_kernel, matmul_dtype=matmul_dtype)
    return pl.pallas_call(
        kernel,
        out_shape=jax.ShapeDtypeStruct((B, C, L), jnp.float32),
        grid=(B,),
        in_specs=[
            pl.BlockSpec((None, C, L), lambda b: (b, 0, 0)),
            pl.BlockSpec((None, C, C), lambda b: (b, 0, 0)),
            pl.BlockSpec((None, C, C), lambda b: (b, 0, 0)),
            pl.BlockSpec((None, C, 4), lambda b: (b, 0, 0)),
        ],
        out_specs=pl.BlockSpec((None, C, L), lambda b: (b, 0, 0)),
        compiler_params=pltpu.CompilerParams(
            dimension_semantics=("parallel",)),
    )(x, w1, w2, bn)


def trunk_branch_forward(x_ncl, params, in_channel, out_channel, kernel_size,
                         *, matmul_dtype=jnp.float32):
    """Single-module forward matching TrunkBranch.forward.

    x_ncl: (1, C, L) with C = in_channel*out_channel, L = kernel_size (PyTorch NCL).
    Returns (out_channel, in_channel, kernel_size).
    """
    C = in_channel * out_channel
    L = kernel_size
    assert x_ncl.shape == (1, C, L), "TrunkBranch.view requires N*L == kernel_size (N=1)"
    out = trunk_branch_forward_batched(
        x_ncl,                       # the batch dim doubles as the (single) branch axis
        params["w1"][None], params["w2"][None], params["bn"][None],
        matmul_dtype=matmul_dtype)
    # (C, L) -> (out_channel, in_channel, L): contiguous row-major reshape (bitcast).
    return out[0].reshape(out_channel, in_channel, kernel_size)


def init_params(key, in_channel, out_channel):
    C = in_channel * out_channel
    ks = jax.random.split(key, 8)
    scale = 1.0 / jnp.sqrt(jnp.float32(C))   # Conv1d default init scale (fan_in = C * 1)
    g1 = 1.0 + 0.1 * jax.random.normal(ks[4], (C, 1), jnp.float32)
    be1 = 0.1 * jax.random.normal(ks[5], (C, 1), jnp.float32)
    g2 = 1.0 + 0.1 * jax.random.normal(ks[6], (C, 1), jnp.float32)
    be2 = 0.1 * jax.random.normal(ks[7], (C, 1), jnp.float32)
    return {
        "w1": jax.random.uniform(ks[0], (C, C), jnp.float32, -scale, scale),
        "w2": jax.random.uniform(ks[2], (C, C), jnp.float32, -scale, scale),
        # Conv biases kept ONLY for the reference check (they cancel under training-mode
        # BN and are NOT passed to the kernel).
        "b1": jax.random.uniform(ks[1], (C, 1), jnp.float32, -scale, scale),
        "b2": jax.random.uniform(ks[3], (C, 1), jnp.float32, -scale, scale),
        "g1": g1, "be1": be1, "g2": g2, "be2": be2,
        # Packed per-channel BN params: a single (C, 4) kernel input.
        "bn": jnp.concatenate([g1, be1, g2, be2], axis=1),
    }


def _reference(x_ncl, params, in_channel, out_channel, kernel_size):
    """Pure-JAX emulation of the PyTorch module (incl. conv biases, training-mode BN)."""
    C = in_channel * out_channel
    x = x_ncl.reshape(C, kernel_size)

    def block(h, w, b, g, be):
        y = jnp.dot(w, h, precision=jax.lax.Precision.HIGHEST) + b
        mean = y.mean(axis=-1, keepdims=True)
        var = ((y - mean) ** 2).mean(axis=-1, keepdims=True)   # biased, like BN training
        yn = (y - mean) / jnp.sqrt(var + EPS) * g + be
        return jnp.maximum(yn, 0.0)

    h1 = block(x, params["w1"], params["b1"], params["g1"], params["be1"])
    h2 = block(h1, params["w2"], params["b2"], params["g2"], params["be2"])
    return h2.reshape(out_channel, in_channel, kernel_size)


if __name__ == "__main__":
    in_channel, out_channel, kernel_size = 4, 8, 16
    C = in_channel * out_channel      # 32

    key = jax.random.PRNGKey(0)
    kx, kp = jax.random.split(key)
    x = jax.random.normal(kx, (1, C, kernel_size), jnp.float32)   # PyTorch NCL input
    params = init_params(kp, in_channel, out_channel)

    # Single-module forward (matches the PyTorch TrunkBranch exactly).
    out = trunk_branch_forward(x, params, in_channel, out_channel, kernel_size)
    out = jax.block_until_ready(out)
    assert out.shape == (out_channel, in_channel, kernel_size)

    # Correctness: reference includes the conv biases -> demonstrates they cancel.
    ref = _reference(x, params, in_channel, out_channel, kernel_size)
    max_err = float(jnp.max(jnp.abs(out - ref)))
    assert jnp.allclose(out, ref, atol=2e-3, rtol=2e-3), max_err

    # Multi-branch fused call: grid over branches, 'parallel' axis (megacore on v7x).
    B = 4
    kb = jax.random.split(jax.random.PRNGKey(1), 1 + B)
    xb = jax.random.normal(kb[0], (B, C, kernel_size), jnp.float32)
    pb = [init_params(k, in_channel, out_channel) for k in kb[1:]]
    w1b = jnp.stack([p["w1"] for p in pb])
    w2b = jnp.stack([p["w2"] for p in pb])
    bnb = jnp.stack([p["bn"] for p in pb])
    outb = jax.block_until_ready(trunk_branch_forward_batched(xb, w1b, w2b, bnb))
    assert outb.shape == (B, C, kernel_size)

    print("KERNEL_OK")
</pallas_src>

<mosaic_0001>
module attributes {stable_mosaic.version = 11 : i64} {
  func.func @_trunkbranch_kernel(%arg0: i32, %arg1: memref<1x32x16xf32, #tpu.memory_space<vmem>>, %arg2: memref<1x32x32xf32, #tpu.memory_space<vmem>>, %arg3: memref<1x32x32xf32, #tpu.memory_space<vmem>>, %arg4: memref<1x32x4xf32, #tpu.memory_space<vmem>>, %arg5: memref<1x32x16xf32, #tpu.memory_space<vmem>>) attributes {dimension_semantics = [#tpu.dimension_semantics<parallel>], iteration_bounds = array<i64: 1>, scalar_prefetch = 0 : i64, scratch_operands = 0 : i64, tpu.core_type = #tpu.core_type<tc>, window_params = [{transform_indices = @transform_0, window_bounds = array<i64: 1, 32, 16>}, {transform_indices = @transform_1, window_bounds = array<i64: 1, 32, 32>}, {transform_indices = @transform_2, window_bounds = array<i64: 1, 32, 32>}, {transform_indices = @transform_3, window_bounds = array<i64: 1, 32, 4>}, {transform_indices = @transform_4, window_bounds = array<i64: 1, 32, 16>}]} {
    %c0 = arith.constant 0 : index
    %c0_0 = arith.constant 0 : index
    %c0_1 = arith.constant 0 : index
    %0 = vector.load %arg1[%c0, %c0_0, %c0_1] : memref<1x32x16xf32, #tpu.memory_space<vmem>>, vector<1x32x16xf32>
    %1 = vector.shape_cast %0 : vector<1x32x16xf32> to vector<32x16xf32>
    %c0_2 = arith.constant 0 : index
    %c0_3 = arith.constant 0 : index
    %c0_4 = arith.constant 0 : index
    %2 = vector.load %arg4[%c0_2, %c0_3, %c0_4] : memref<1x32x4xf32, #tpu.memory_space<vmem>>, vector<1x32x1xf32>
    %3 = vector.shape_cast %2 : vector<1x32x1xf32> to vector<32x1xf32>
    %c0_5 = arith.constant 0 : index
    %c0_6 = arith.constant 0 : index
    %c1 = arith.constant 1 : index
    %4 = vector.load %arg4[%c0_5, %c0_6, %c1] : memref<1x32x4xf32, #tpu.memory_space<vmem>>, vector<1x32x1xf32>
    %5 = vector.shape_cast %4 : vector<1x32x1xf32> to vector<32x1xf32>
    %c0_7 = arith.constant 0 : index
    %c0_8 = arith.constant 0 : index
    %c2 = arith.constant 2 : index
    %6 = vector.load %arg4[%c0_7, %c0_8, %c2] : memref<1x32x4xf32, #tpu.memory_space<vmem>>, vector<1x32x1xf32>
    %7 = vector.shape_cast %6 : vector<1x32x1xf32> to vector<32x1xf32>
    %c0_9 = arith.constant 0 : index
    %c0_10 = arith.constant 0 : index
    %c3 = arith.constant 3 : index
    %8 = vector.load %arg4[%c0_9, %c0_10, %c3] : memref<1x32x4xf32, #tpu.memory_space<vmem>>, vector<1x32x1xf32>
    %9 = vector.shape_cast %8 : vector<1x32x1xf32> to vector<32x1xf32>
    %c0_11 = arith.constant 0 : index
    %c0_12 = arith.constant 0 : index
    %c0_13 = arith.constant 0 : index
    %10 = vector.load %arg2[%c0_11, %c0_12, %c0_13] : memref<1x32x32xf32, #tpu.memory_space<vmem>>, vector<1x32x32xf32>
    %11 = vector.shape_cast %10 : vector<1x32x32xf32> to vector<32x32xf32>
    %cst = arith.constant dense<0.000000e+00> : vector<32x16xf32>
    %12 = tpu.matmul %11, %1, %cst {dimension_numbers = #tpu.dot_dimension_numbers<[1], [0], [0], [1], [0, 0, 1, 1], [], []>} : vector<32x32xf32>, vector<32x16xf32>, vector<32x16xf32> -> vector<32x16xf32>
    %cst_14 = arith.constant dense<0.000000e+00> : vector<32xf32>
    %13 = vector.multi_reduction <add>, %12, %cst_14 [1] : vector<32x16xf32> to vector<32xf32>
    %14 = vector.shape_cast %13 : vector<32xf32> to vector<32x1xf32>
    %cst_15 = arith.constant 1.600000e+01 : f32
    %15 = vector.broadcast %cst_15 : f32 to vector<32x1xf32>
    %16 = arith.divf %14, %15 : vector<32x1xf32>
    %17 = arith.mulf %12, %12 : vector<32x16xf32>
    %cst_16 = arith.constant dense<0.000000e+00> : vector<32xf32>
    %18 = vector.multi_reduction <add>, %17, %cst_16 [1] : vector<32x16xf32> to vector<32xf32>
    %19 = vector.shape_cast %18 : vector<32xf32> to vector<32x1xf32>
    %cst_17 = arith.constant 1.600000e+01 : f32
    %20 = vector.broadcast %cst_17 : f32 to vector<32x1xf32>
    %21 = arith.divf %19, %20 : vector<32x1xf32>
    %22 = arith.mulf %16, %16 : vector<32x1xf32>
    %23 = arith.subf %21, %22 : vector<32x1xf32>
    %cst_18 = arith.constant 9.99999974E-6 : f32
    %24 = vector.broadcast %cst_18 : f32 to vector<32x1xf32>
    %25 = arith.addf %23, %24 : vector<32x1xf32>
    %26 = math.rsqrt %25 : vector<32x1xf32>
    %27 = arith.mulf %3, %26 : vector<32x1xf32>
    %28 = vector.broadcast %16 : vector<32x1xf32> to vector<32x16xf32>
    %29 = arith.subf %12, %28 : vector<32x16xf32>
    %30 = vector.broadcast %27 : vector<32x1xf32> to vector<32x16xf32>
    %31 = arith.mulf %29, %30 : vector<32x16xf32>
    %32 = vector.broadcast %5 : vector<32x1xf32> to vector<32x16xf32>
    %33 = arith.addf %31, %32 : vector<32x16xf32>
    %cst_19 = arith.constant 0.000000e+00 : f32
    %34 = vector.broadcast %cst_19 : f32 to vector<32x16xf32>
    %35 = arith.maximumf %33, %34 : vector<32x16xf32>
    %c0_20 = arith.constant 0 : index
    %c0_21 = arith.constant 0 : index
    %c0_22 = arith.constant 0 : index
    %36 = vector.load %arg3[%c0_20, %c0_21, %c0_22] : memref<1x32x32xf32, #tpu.memory_space<vmem>>, vector<1x32x32xf32>
    %37 = vector.shape_cast %36 : vector<1x32x32xf32> to vector<32x32xf32>
    %cst_23 = arith.constant dense<0.000000e+00> : vector<32x16xf32>
    %38 = tpu.matmul %37, %35, %cst_23 {dimension_numbers = #tpu.dot_dimension_numbers<[1], [0], [0], [1], [0, 0, 1, 1], [], []>} : vector<32x32xf32>, vector<32x16xf32>, vector<32x16xf32> -> vector<32x16xf32>
    %cst_24 = arith.constant dense<0.000000e+00> : vector<32xf32>
    %39 = vector.multi_reduction <add>, %38, %cst_24 [1] : vector<32x16xf32> to vector<32xf32>
    %40 = vector.shape_cast %39 : vector<32xf32> to vector<32x1xf32>
    %cst_25 = arith.constant 1.600000e+01 : f32
    %41 = vector.broadcast %cst_25 : f32 to vector<32x1xf32>
    %42 = arith.divf %40, %41 : vector<32x1xf32>
    %43 = arith.mulf %38, %38 : vector<32x16xf32>
    %cst_26 = arith.constant dense<0.000000e+00> : vector<32xf32>
    %44 = vector.multi_reduction <add>, %43, %cst_26 [1] : vector<32x16xf32> to vector<32xf32>
    %45 = vector.shape_cast %44 : vector<32xf32> to vector<32x1xf32>
    %cst_27 = arith.constant 1.600000e+01 : f32
    %46 = vector.broadcast %cst_27 : f32 to vector<32x1xf32>
    %47 = arith.divf %45, %46 : vector<32x1xf32>
    %48 = arith.mulf %42, %42 : vector<32x1xf32>
    %49 = arith.subf %47, %48 : vector<32x1xf32>
    %cst_28 = arith.constant 9.99999974E-6 : f32
    %50 = vector.broadcast %cst_28 : f32 to vector<32x1xf32>
    %51 = arith.addf %49, %50 : vector<32x1xf32>
    %52 = math.rsqrt %51 : vector<32x1xf32>
    %53 = arith.mulf %7, %52 : vector<32x1xf32>
    %54 = vector.broadcast %42 : vector<32x1xf32> to vector<32x16xf32>
    %55 = arith.subf %38, %54 : vector<32x16xf32>
    %56 = vector.broadcast %53 : vector<32x1xf32> to vector<32x16xf32>
    %57 = arith.mulf %55, %56 : vector<32x16xf32>
    %58 = vector.broadcast %9 : vector<32x1xf32> to vector<32x16xf32>
    %59 = arith.addf %57, %58 : vector<32x16xf32>
    %cst_29 = arith.constant 0.000000e+00 : f32
    %60 = vector.broadcast %cst_29 : f32 to vector<32x16xf32>
    %61 = arith.maximumf %59, %60 : vector<32x16xf32>
    %c0_30 = arith.constant 0 : index
    %c0_31 = arith.constant 0 : index
    %c0_32 = arith.constant 0 : index
    %62 = vector.load %arg5[%c0_30, %c0_31, %c0_32] : memref<1x32x16xf32, #tpu.memory_space<vmem>>, vector<1x32x16xf32>
    %63 = vector.shape_cast %62 : vector<1x32x16xf32> to vector<32x16xf32>
    %64 = vector.shape_cast %61 : vector<32x16xf32> to vector<1x32x16xf32>
    tpu.vector_store %arg5[%c0_30, %c0_31, %c0_32], %64 {strides = array<i32>} : memref<1x32x16xf32, #tpu.memory_space<vmem>>, vector<1x32x16xf32>,
    return
  }
  func.func @transform_0(%arg0: i32) -> (i32, i32, i32) {
    %c0_i32 = arith.constant 0 : i32
    %c0_i32_0 = arith.constant 0 : i32
    %c0_i32_1 = arith.constant 0 : i32
    return %arg0, %c0_i32, %c0_i32_0 : i32, i32, i32
  }
  func.func @transform_1(%arg0: i32) -> (i32, i32, i32) {
    %c0_i32 = arith.constant 0 : i32
    %c0_i32_0 = arith.constant 0 : i32
    %c0_i32_1 = arith.constant 0 : i32
    return %arg0, %c0_i32, %c0_i32_0 : i32, i32, i32
  }
  func.func @transform_2(%arg0: i32) -> (i32, i32, i32) {
    %c0_i32 = arith.constant 0 : i32
    %c0_i32_0 = arith.constant 0 : i32
    %c0_i32_1 = arith.constant 0 : i32
    return %arg0, %c0_i32, %c0_i32_0 : i32, i32, i32
  }
  func.func @transform_3(%arg0: i32) -> (i32, i32, i32) {
    %c0_i32 = arith.constant 0 : i32
    %c0_i32_0 = arith.constant 0 : i32
    %c0_i32_1 = arith.constant 0 : i32
    return %arg0, %c0_i32, %c0_i32_0 : i32, i32, i32
  }
  func.func @transform_4(%arg0: i32) -> (i32, i32, i32) {
    %c0_i32 = arith.constant 0 : i32
    %c0_i32_0 = arith.constant 0 : i32
    %c0_i32_1 = arith.constant 0 : i32
    return %arg0, %c0_i32, %c0_i32_0 : i32, i32, i32
  }
}

</mosaic_0001>

<bundles_post_ra>
// kernel: tpu_custom_call.1
= control target key start
LH: loop header
LB: loop body
LE: loop exit
PB: predicated region body
PF: predicated region fallthrough
CT: control target
= control target key end

     0   :  { %vm29_vm0 = vcmask 261120   ;;  %vm127_vm1 = vcmask 130048   ;;  %v542_v24 = vmov 0   ;;  %v543_v26 = vmov 1   ;;  %s736_s0 = inlined_call_operand.vmem [shape: f32[1,32,16], index: 0, kind: input, shape index: {}]   ;;  %s737_s1 = inlined_call_operand.vmem [shape: f32[1,32,32], index: 1, kind: input, shape index: {}]   ;;  %s738_s3 = inlined_call_operand.vmem [shape: f32[1,32,4], index: 3, kind: input, shape index: {}]   ;;  %s739_s2 = inlined_call_operand.vmem [shape: f32[1,32,32], index: 2, kind: input, shape index: {}]   ;;  %s740_s4 = inlined_call_operand.vmem [shape: f32[1,32,16], index: 4, kind: output, shape index: {}]  }
   0x1   :  { %v20_v0 = vld [vmem:[%s736_s0 + $0x18] sm:$0xff]  ;;  %v19_v1 = vld [vmem:[%s736_s0 + $0x10] sm:$0xff]  ;;  %v25_v2 = vld [vmem:[%s737_s1] sm:$0xff]  ;;  %514 = vset.pattern.permute.xlu0 %v542_v24  ;;  %515 = vset.pattern.permute.xlu1 %v543_v26 }
   0x2   :  { %482 = vmatprep.subr.mxu0 %v20_v0  ;;  %v18_v3 = vld [vmem:[%s736_s0 + $0x8] sm:$0xff]  ;;  %490 = vmatprep.mubr.msk.f32.mxu0 %vm29_vm0, %v25_v2  ;;  %v17_v4 = vld [vmem:[%s736_s0] sm:$0xff]  ;;  %v27_v6 = vld [vmem:[%s737_s1 + $0x10] sm:$0xff] }
   0x3   :  { %483 = vmatpush3.msra.mxu0 %v20_v0  ;;  %v26_v5 = vld [vmem:[%s737_s1 + $0x8] sm:$0xff]  ;;  %v28_v7 = vld [vmem:[%s737_s1 + $0x18] sm:$0xff]  ;;  %v647_v60 = vld [vmem:[%s738_s3 + $0x10] sm:$0xff] }
   0x4   :  { %484 = vmatprep.subr.mxu0 %v19_v1  ;;  %v630_v25 = vld [vmem:[%s738_s3 + $0x18] sm:$0xff]  ;;  %v641_v57 = vld [vmem:[%s738_s3 + $0x8] sm:$0xff]  ;;  %v653_v62 = vld [vmem:[%s738_s3] sm:$0xff] }
   0x5   :  { %485 = vmatpush3.msra.mxu0 %v19_v1  ;;  %v241_v2 = vld [vmem:[%s739_s2] sm:$0xff] }
   0x6   :  { %486 = vmatprep.subr.mxu0 %v18_v3  ;;  %504 = vmatprep.mubr.msk.f32.mxu1 %vm29_vm0, %v241_v2 }
   0x7   :  { %487 = vmatpush3.msra.mxu0 %v18_v3 }
   0x8   :  { %488 = vmatprep.subr.mxu0 %v17_v4 }
   0x9   :  { %489 = vmatpush3.msra.mxu0 %v17_v4 }
   0xa   :  { %491 = vmatmul.mubr.msk.f32.vlgmr.msra.gmra.mxu0 %vm29_vm0, %v26_v5 }
   0xb   :  { %493 = vmatprep.mubr.msk.f32.mxu0 %vm29_vm0, %v27_v6 }
   0xe   :  { %494 = vmatmul.mubr.msk.f32.gmra.mxu0 %vm29_vm0, %v28_v7 }
  0xca   :  { %v599_v8 = vpop.f32.mrf.mxu0 }
  0xcb   :  { %v131_v9 = vsel %vm127_vm1, %v599_v8, 0.0  ;;  %v146_v21 = vmul.f32 %v599_v8, %v599_v8 }
  0xcc   :  { %132 = vadd.xlane.f32.xlu1 %v131_v9  ;;  %v603_v10 = vpop.f32.mrf.mxu0 }
  0xcd   :  { %v128_v18 = vsel %vm127_vm1, %v603_v10, 0.0  ;;  %v145_v19 = vmul.f32 %v603_v10, %v603_v10  ;;  %v152_v23 = vsel %vm127_vm1, %v146_v21, 0.0 }
  0xce   :  { %v605_v11 = vpop.f32.mrf.mxu0 }
  0xcf   :  { %v137_v12 = vsel %vm127_vm1, %v605_v11, 0.0  ;;  %v148_v13 = vmul.f32 %v605_v11, %v605_v11  ;;  %v149_v22 = vsel %vm127_vm1, %v145_v19, 0.0 }
  0xd0   :  { %138 = vadd.xlane.f32.xlu0 %v137_v12  ;;  %v611_v14 = vpop.f32.mrf.mxu0 }
  0xd1   :  { %v158_v15 = vsel %vm127_vm1, %v148_v13, 0.0  ;;  %v147_v16 = vmul.f32 %v611_v14, %v611_v14  ;;  %v134_v17 = vsel %vm127_vm1, %v611_v14, 0.0 }
  0xd2   :  { %159 = vadd.xlane.f32.xlu1 %v158_v15 }
  0xd3   :  { %v155_v20 = vsel %vm127_vm1, %v147_v16, 0.0 }
  0xd4   :  { %135 = vadd.xlane.f32.xlu0 %v134_v17 }
  0xd6   :  { %129 = vadd.xlane.f32.xlu1 %v128_v18 }
  0xd8   :  { %156 = vadd.xlane.f32.xlu0 %v155_v20 }
  0xda   :  { %150 = vadd.xlane.f32.xlu1 %v149_v22 }
  0xdc   :  { %153 = vadd.xlane.f32.xlu0 %v152_v23 }
  0xeb   :  { %230 = vperm.xlu1 %515, %v630_v25  }
  0xef   :  { %516 = vset.pattern.permute.xlu1 %v542_v24 }
 0x155   :  { %v133_v27 = vpop.xlane.xlu1 %132 }
 0x156   :  { %v142_v38 = vmul.f32 0.0625, %v133_v27 }
 0x158   :  { %v166_v41 = vmul.f32 %v142_v38, %v142_v38  ;;  %v186_v19 = vsub.f32 %v599_v8, %v142_v38  ;;  %v242_v8 = vld [vmem:[%s739_s2 + $0x8] sm:$0xff] }
 0x159   :  { %v139_v28 = vpop.xlane.xlu0 %138 }
 0x15a   :  { %v144_v29 = vmul.f32 0.0625, %v139_v28 }
 0x15b   :  { %v160_v30 = vpop.xlane.xlu1 %159 }
 0x15c   :  { %v168_v31 = vmul.f32 %v144_v29, %v144_v29  ;;  %v164_v32 = vmul.f32 0.0625, %v160_v30  ;;  %v188_v3 = vsub.f32 %v605_v11, %v144_v29  ;;  %v243_v30 = vld [vmem:[%s739_s2 + $0x10] sm:$0xff] }
 0x15d   :  { %v136_v33 = vpop.xlane.xlu0 %135 }
 0x15e   :  { %v172_v34 = vsub.f32 %v164_v32, %v168_v31  ;;  %v143_v46 = vmul.f32 0.0625, %v136_v33 }
 0x15f   :  { %v130_v35 = vpop.xlane.xlu1 %129 }
 0x160   :  { %v176_v36 = vadd.f32 1e-05, %v172_v34  ;;  %v633_v42 = vmul.f32 0.0625, %v130_v35  ;;  %v167_v51 = vmul.f32 %v143_v46, %v143_v46  ;;  %v187_v16 = vsub.f32 %v611_v14, %v143_v46 }
 0x161   :  { %v157_v37 = vpop.xlane.xlu0 %156 }
 0x162   :  { %526 = vrsqrt.f32 %v176_v36  ;;  %v165_v47 = vmul.f32 %v633_v42, %v633_v42  ;;  %v163_v49 = vmul.f32 0.0625, %v157_v37  ;;  %v185_v23 = vsub.f32 %v603_v10, %v633_v42  ;;  %v244_v10 = vld [vmem:[%s739_s2 + $0x18] sm:$0xff] }
 0x163   :  { %v151_v39 = vpop.xlane.xlu1 %150 }
 0x164   :  { %v161_v44 = vmul.f32 0.0625, %v151_v39  ;;  %v171_v53 = vsub.f32 %v163_v49, %v167_v51 }
 0x165   :  { %v154_v40 = vpop.xlane.xlu0 %153 }
 0x166   :  { %v162_v43 = vmul.f32 0.0625, %v154_v40  ;;  %v169_v50 = vsub.f32 %v161_v44, %v165_v47  ;;  %v175_v56 = vadd.f32 1e-05, %v171_v53  ;;  %v544_v47 = vmov 2  }
 0x167   :  { %v231_v5 = vpop.permute.xlu1 %230 }
 0x168   :  { %v170_v45 = vsub.f32 %v162_v43, %v166_v41  ;;  %v173_v54 = vadd.f32 1e-05, %v169_v50 }
 0x16a   :  { %v174_v48 = vadd.f32 1e-05, %v170_v45 }
 0x16c   :  { %528 = vrsqrt.f32 %v174_v48 }
 0x16d   :  { %530 = vrsqrt.f32 %v173_v54 }
 0x16e   :  { %532 = vrsqrt.f32 %v175_v56 }
 0x16f   :  { %v527_v52 = vpop.eup %526 }
 0x170   :  { %v184_v55 = vmul.f32 %v527_v52, %v630_v25 }
 0x172   :  { %206 = vperm.xlu0 %514, %v184_v55  }
 0x176   :  { %520 = vset.pattern.permute.xlu0 %v544_v47 }
 0x179   :  { %v529_v58 = vpop.eup %528 }
 0x17a   :  { %v182_v59 = vmul.f32 %v529_v58, %v641_v57  ;;  %v531_v61 = vpop.eup %530 }
 0x17b   :  { %v181_v63 = vmul.f32 %v531_v61, %v653_v62  ;;  %v533_v0 = vpop.eup %532 }
 0x17c   :  { %196 = vperm.xlu1 %516, %v182_v59   ;;  %v183_v1 = vmul.f32 %v533_v0, %v647_v60 }
 0x180   :  { %517 = vset.pattern.permute.xlu1 %v543_v26 }
 0x181   :  { %225 = vperm.xlu1 %517, %v647_v60  }
 0x185   :  { %518 = vset.pattern.permute.xlu1 %v542_v24 }
 0x186   :  { %191 = vperm.xlu1 %518, %v181_v63  }
 0x18a   :  { %201 = vperm.xlu1 %518, %v183_v1  }
 0x18e   :  { %519 = vset.pattern.permute.xlu1 %v543_v26 }
 0x18f   :  { %220 = vperm.xlu1 %519, %v641_v57  }
 0x193   :  { %215 = vperm.xlu1 %519, %v653_v62  }
 0x197   :  { %521 = vset.pattern.permute.xlu1 %v544_v47 }
 0x1ed   :  { %v207_v4 = vpop.permute.xlu0 %206 }
 0x1ee   :  { %v212_v6 = vmul.f32 %v207_v4, %v188_v3 }
 0x1f0   :  { %v236_v7 = vadd.f32 %v231_v5, %v212_v6 }
 0x1f2   :  { %v240_v9 = vmax.f32 %v236_v7, 0.0 }
 0x1f4   :  { %496 = vmatprep.subr.mxu1 %v240_v9 }
 0x1f5   :  { %497 = vmatpush3.msra.mxu1 %v240_v9 }
 0x1f7   :  { %v197_v12 = vpop.permute.xlu1 %196 }
 0x1f8   :  { %v210_v21 = vmul.f32 %v197_v12, %v186_v19 }
 0x1fc   :  { %v226_v13 = vpop.permute.xlu1 %225 }
 0x201   :  { %v192_v15 = vpop.permute.xlu1 %191 }
 0x202   :  { %v209_v26 = vmul.f32 %v192_v15, %v185_v23 }
 0x205   :  { %v202_v17 = vpop.permute.xlu1 %201 }
 0x206   :  { %v211_v18 = vmul.f32 %v202_v17, %v187_v16 }
 0x208   :  { %v235_v20 = vadd.f32 %v226_v13, %v211_v18 }
 0x20a   :  { %v239_v22 = vmax.f32 %v235_v20, 0.0  ;;  %v221_v11 = vpop.permute.xlu1 %220 }
 0x20b   :  { %v234_v24 = vadd.f32 %v221_v11, %v210_v21  ;;  %v545_v11 = vmov 3  }
 0x20c   :  { %498 = vmatprep.subr.mxu1 %v239_v22 }
 0x20d   :  { %v238_v27 = vmax.f32 %v234_v24, 0.0  ;;  %499 = vmatpush3.msra.mxu1 %v239_v22 }
 0x20e   :  { %v216_v28 = vpop.permute.xlu1 %215 }
 0x20f   :  { %v233_v29 = vadd.f32 %v216_v28, %v209_v26  ;;  %500 = vmatprep.subr.mxu1 %v238_v27 }
 0x210   :  { %501 = vmatpush3.msra.mxu1 %v238_v27 }
 0x211   :  { %v237_v14 = vmax.f32 %v233_v29, 0.0 }
 0x213   :  { %502 = vmatprep.subr.mxu1 %v237_v14 }
 0x214   :  { %503 = vmatpush3.msra.mxu1 %v237_v14 }
 0x215   :  { %505 = vmatmul.mubr.msk.f32.vlgmr.msra.gmra.mxu1 %vm29_vm0, %v242_v8 }
 0x216   :  { %507 = vmatprep.mubr.msk.f32.mxu1 %vm29_vm0, %v243_v30 }
 0x219   :  { %508 = vmatmul.mubr.msk.f32.gmra.mxu1 %vm29_vm0, %v244_v10 }
 0x2d5   :  { %v680_v31 = vpop.f32.mrf.mxu1 }
 0x2d6   :  { %v345_v32 = vsel %vm127_vm1, %v680_v31, 0.0  ;;  %v359_v36 = vmul.f32 %v680_v31, %v680_v31 }
 0x2d7   :  { %346 = vadd.xlane.f32.xlu0 %v345_v32  ;;  %v684_v33 = vpop.f32.mrf.mxu1 }
 0x2d8   :  { %v342_v34 = vsel %vm127_vm1, %v684_v33, 0.0  ;;  %v358_v35 = vmul.f32 %v684_v33, %v684_v33  ;;  %v365_v40 = vsel %vm127_vm1, %v359_v36, 0.0 }
 0x2d9   :  { %343 = vadd.xlane.f32.xlu1 %v342_v34  ;;  %v692_v37 = vpop.f32.mrf.mxu1 }
 0x2da   :  { %v362_v38 = vsel %vm127_vm1, %v358_v35, 0.0  ;;  %v351_v43 = vsel %vm127_vm1, %v692_v37, 0.0  ;;  %v361_v44 = vmul.f32 %v692_v37, %v692_v37 }
 0x2db   :  { %363 = vadd.xlane.f32.xlu0 %v362_v38  ;;  %v695_v39 = vpop.f32.mrf.mxu1 }
 0x2dc   :  { %v360_v41 = vmul.f32 %v695_v39, %v695_v39  ;;  %v348_v42 = vsel %vm127_vm1, %v695_v39, 0.0  ;;  %v371_v46 = vsel %vm127_vm1, %v361_v44, 0.0 }
 0x2dd   :  { %366 = vadd.xlane.f32.xlu1 %v365_v40 }
 0x2de   :  { %v368_v45 = vsel %vm127_vm1, %v360_v41, 0.0 }
 0x2df   :  { %349 = vadd.xlane.f32.xlu0 %v348_v42 }
 0x2e1   :  { %352 = vadd.xlane.f32.xlu1 %v351_v43 }
 0x2e3   :  { %369 = vadd.xlane.f32.xlu0 %v368_v45 }
 0x2e5   :  { %372 = vadd.xlane.f32.xlu1 %v371_v46 }
 0x360   :  { %v347_v48 = vpop.xlane.xlu0 %346 }
 0x361   :  { %v355_v50 = vmul.f32 0.0625, %v347_v48 }
 0x362   :  { %v344_v49 = vpop.xlane.xlu1 %343 }
 0x363   :  { %v354_v51 = vmul.f32 0.0625, %v344_v49  ;;  %v379_v56 = vmul.f32 %v355_v50, %v355_v50  ;;  %v399_v8 = vsub.f32 %v680_v31, %v355_v50 }
 0x364   :  { %v364_v52 = vpop.xlane.xlu0 %363 }
 0x365   :  { %v378_v53 = vmul.f32 %v354_v51, %v354_v51  ;;  %v374_v54 = vmul.f32 0.0625, %v364_v52 }
 0x366   :  { %v367_v55 = vpop.xlane.xlu1 %366 }
 0x367   :  { %v382_v58 = vsub.f32 %v374_v54, %v378_v53  ;;  %v375_v59 = vmul.f32 0.0625, %v367_v55 }
 0x368   :  { %v350_v2 = vpop.xlane.xlu0 %349 }
 0x369   :  { %v386_v61 = vadd.f32 1e-05, %v382_v58  ;;  %v383_v63 = vsub.f32 %v375_v59, %v379_v56  ;;  %v356_v9 = vmul.f32 0.0625, %v350_v2 }
 0x36a   :  { %v353_v0 = vpop.xlane.xlu1 %352 }
 0x36b   :  { %534 = vrsqrt.f32 %v386_v61  ;;  %v387_v1 = vadd.f32 1e-05, %v383_v63  ;;  %v357_v4 = vmul.f32 0.0625, %v353_v0  ;;  %v380_v12 = vmul.f32 %v356_v9, %v356_v9 }
 0x36c   :  { %v370_v7 = vpop.xlane.xlu0 %369  ;;  %v400_v31 = vsub.f32 %v695_v39, %v356_v9 }
 0x36d   :  { %536 = vrsqrt.f32 %v387_v1  ;;  %v381_v5 = vmul.f32 %v357_v4, %v357_v4  ;;  %v376_v15 = vmul.f32 0.0625, %v370_v7  ;;  %v401_v40 = vsub.f32 %v692_v37, %v357_v4 }
 0x36e   :  { %v373_v3 = vpop.xlane.xlu1 %372 }
 0x36f   :  { %v377_v6 = vmul.f32 0.0625, %v373_v3  ;;  %v384_v18 = vsub.f32 %v376_v15, %v380_v12 }
 0x371   :  { %v385_v13 = vsub.f32 %v377_v6, %v381_v5  ;;  %v388_v22 = vadd.f32 1e-05, %v384_v18 }
 0x373   :  { %v389_v17 = vadd.f32 1e-05, %v385_v13 }
 0x375   :  { %538 = vrsqrt.f32 %v389_v17 }
 0x376   :  { %540 = vrsqrt.f32 %v388_v22 }
 0x378   :  { %v535_v16 = vpop.eup %534 }
 0x379   :  { %v394_v19 = vmul.f32 %v535_v16, %v653_v62 }
 0x37a   :  { %v537_v20 = vpop.eup %536 }
 0x37b   :  { %404 = vperm.xlu0 %520, %v394_v19   ;;  %v395_v21 = vmul.f32 %v537_v20, %v641_v57 }
 0x37d   :  { %409 = vperm.xlu1 %521, %v395_v21  }
 0x37f   :  { %525 = vset.pattern.permute.xlu0 %v545_v11 }
 0x381   :  { %522 = vset.pattern.permute.xlu1 %v545_v11 }
 0x382   :  { %427 = vperm.xlu1 %522, %v653_v62   ;;  %v539_v23 = vpop.eup %538  ;;  %v398_v62 = vsub.f32 %v684_v33, %v354_v51 }
 0x383   :  { %v397_v24 = vmul.f32 %v539_v23, %v630_v25  ;;  %v541_v26 = vpop.eup %540 }
 0x384   :  { %v396_v27 = vmul.f32 %v541_v26, %v647_v60 }
 0x386   :  { %431 = vperm.xlu1 %522, %v641_v57  }
 0x38a   :  { %435 = vperm.xlu1 %522, %v647_v60  }
 0x38e   :  { %523 = vset.pattern.permute.xlu1 %v544_v47 }
 0x38f   :  { %419 = vperm.xlu1 %523, %v397_v24  }
 0x393   :  { %414 = vperm.xlu1 %523, %v396_v27  }
 0x397   :  { %524 = vset.pattern.permute.xlu1 %v545_v11 }
 0x398   :  { %439 = vperm.xlu1 %524, %v630_v25  }
 0x3f6   :  { %v405_v29 = vpop.permute.xlu0 %404 }
 0x3f7   :  { %v422_v14 = vmul.f32 %v405_v29, %v398_v62 }
 0x3f8   :  { %v410_v28 = vpop.permute.xlu1 %409 }
 0x3f9   :  { %v423_v10 = vmul.f32 %v410_v28, %v399_v8 }
 0x3fd   :  { %v428_v57 = vpop.permute.xlu1 %427 }
 0x3fe   :  { %v442_v30 = vadd.f32 %v428_v57, %v422_v14 }
 0x400   :  { %v446_v32 = vmax.f32 %v442_v30, 0.0 }
 0x401   :  { %v432_v34 = vpop.permute.xlu1 %431 }
 0x402   :  { %450 = vst.msk [vmem:[%s740_s4] sm:$0xff] %vm127_vm1, %v446_v32  ;;  %v443_v60 = vadd.f32 %v432_v34, %v423_v10 }
 0x404   :  { %v447_v35 = vmax.f32 %v443_v60, 0.0 }
 0x405   :  { %v436_v25 = vpop.permute.xlu1 %435 }
 0x406   :  { %451 = vst.msk [vmem:[%s740_s4 + $0x8] sm:$0xff] %vm127_vm1, %v447_v35 }
 0x40a   :  { %v420_v33 = vpop.permute.xlu1 %419 }
 0x40b   :  { %v425_v42 = vmul.f32 %v420_v33, %v401_v40 }
 0x40e   :  { %v415_v36 = vpop.permute.xlu1 %414 }
 0x40f   :  { %v424_v38 = vmul.f32 %v415_v36, %v400_v31 }
 0x411   :  { %v444_v41 = vadd.f32 %v436_v25, %v424_v38 }
 0x413   :  { %v448_v43 = vmax.f32 %v444_v41, 0.0  ;;  %v440_v44 = vpop.permute.xlu1 %439 }
 0x414   :  { %v445_v45 = vadd.f32 %v440_v44, %v425_v42 }
 0x415   :  { %452 = vst.msk [vmem:[%s740_s4 + $0x10] sm:$0xff] %vm127_vm1, %v448_v43 }
 0x416   :  { %v449_v46 = vmax.f32 %v445_v45, 0.0 }
 0x418   :  { %453 = vst.msk [vmem:[%s740_s4 + $0x18] sm:$0xff] %vm127_vm1, %v449_v46 }

</bundles_post_ra>
